<compile_context>
chip_gen: v6e
topology: v6e:2x2x1
jax: 0.10.0
libtpu: 0.0.40
codegen_flags: <defaults>
</compile_context>

<pallas_src>
import jax
import jax.numpy as jnp
import numpy as np
from jax import lax
from jax.experimental import pallas as pl
from jax.experimental.pallas import tpu as pltpu


def _attention_block_kernel(g_ref, x_ref, wg_ref, bg_ref, wx_ref, bx_ref,
                            wpsi_ref, bpsi_ref, o_ref):
    """One (image, spatial-tile) per grid step.

    g_ref   : (1, F_g, T)   gating-signal tile (channels on sublanes)
    x_ref   : (1, F_l, T)   input tile
    wg_ref  : (F_l, F_g)    W_g 1x1 conv weight (BN scale folded in)
    bg_ref  : (F_l, 1)      folded bias for W_g path
    wx_ref  : (F_l, F_l)    W_x 1x1 conv weight (BN folded)
    bx_ref  : (F_l, 1)      folded bias for W_x path
    wpsi_ref: (1, F_l)      psi 1x1 conv weight (BN folded)
    bpsi_ref: (1, 1)        folded bias for psi path
    o_ref   : (1, F_l, T)   output tile
    """
    g = g_ref[0]                                   # (F_g, T)
    x = x_ref[0]                                   # (F_l, T)

    # ---- W_g(g), W_x(x): 1x1 convs as channel matmuls + folded BN bias ----
    g1 = jnp.dot(wg_ref[...], g, preferred_element_type=jnp.float32) + bg_ref[...]
    x1 = jnp.dot(wx_ref[...], x, preferred_element_type=jnp.float32) + bx_ref[...]

    # ---- ReLU(g1 + x1) ----
    p = jnp.maximum(g1 + x1, 0.0)                  # (F_l, T)

    # ---- psi: 1x1 conv to a single channel + folded BN, then sigmoid ----
    z = jnp.dot(wpsi_ref[...], p, preferred_element_type=jnp.float32) + bpsi_ref[...]
    psi = jax.nn.sigmoid(z)                        # (1, T), exp on EUP

    # ---- gate the input (sublane broadcast of psi over channels) ----
    o_ref[0] = (x * psi).astype(o_ref.dtype)


def _pick_spatial_tile(hw, f_g, f_l, itemsize=4,
                       budget_bytes=12 * 1024 * 1024):
    """Largest lane-dense tile (multiple of 128, dividing HW) within budget."""
    if hw % 128 != 0:
        return hw                                  # full dim (exempt from 128 rule)
    # double-buffered bytes per spatial element: g + x + out blocks
    per_elem = 2 * (f_g + 2 * f_l) * itemsize
    t_cap = max(128, (budget_bytes // per_elem) // 128 * 128)
    t = 128
    for cand in range(256, min(hw, t_cap) + 1, 128):
        if hw % cand == 0:
            t = cand
    return t


@jax.jit
def attention_block_pallas(g_nchw, x_nchw, wg, bg, wx, bx, wpsi, bpsi):
    """g: (N, F_g, H, W), x: (N, F_l, H, W) float32.  Returns (N, F_l, H, W)."""
    N, F_g, H, W = g_nchw.shape
    _, F_l, _, _ = x_nchw.shape
    HW = H * W
    T = _pick_spatial_tile(HW, F_g, F_l, g_nchw.dtype.itemsize)

    g2 = g_nchw.reshape(N, F_g, HW)                # free reshape (no transpose)
    x2 = x_nchw.reshape(N, F_l, HW)

    out = pl.pallas_call(
        _attention_block_kernel,
        out_shape=jax.ShapeDtypeStruct((N, F_l, HW), x_nchw.dtype),
        grid_spec=pltpu.PrefetchScalarGridSpec(
            num_scalar_prefetch=0,
            grid=(N, HW // T),
            in_specs=[
                pl.BlockSpec((1, F_g, T), lambda n, s: (n, 0, s)),
                pl.BlockSpec((1, F_l, T), lambda n, s: (n, 0, s)),
                # Weights/biases: constant index_map -> stay resident in VMEM.
                pl.BlockSpec((F_l, F_g), lambda n, s: (0, 0)),
                pl.BlockSpec((F_l, 1), lambda n, s: (0, 0)),
                pl.BlockSpec((F_l, F_l), lambda n, s: (0, 0)),
                pl.BlockSpec((F_l, 1), lambda n, s: (0, 0)),
                pl.BlockSpec((1, F_l), lambda n, s: (0, 0)),
                pl.BlockSpec((1, 1), lambda n, s: (0, 0)),
            ],
            out_specs=pl.BlockSpec((1, F_l, T), lambda n, s: (n, 0, s)),
        ),
        compiler_params=pltpu.CompilerParams(
            dimension_semantics=("parallel", "parallel"),
            vmem_limit_bytes=48 * 1024 * 1024),
    )(g2, x2, wg, bg, wx, bx, wpsi, bpsi)

    return out.reshape(N, F_l, H, W)


# ---------------------------------------------------------------------------
# Plain-JAX glue: fold eval-mode BatchNorm + conv bias into weight/bias.
# ---------------------------------------------------------------------------
def _fold_conv_bn(w, b, gamma, beta, mean, var, eps=1e-5):
    """w: (Cout, Cin, 1, 1), b: (Cout,) -> (Cout, Cin) weight, (Cout, 1) bias."""
    s = gamma / jnp.sqrt(var + eps)                       # (Cout,)
    w_eff = w[:, :, 0, 0] * s[:, None]                    # (Cout, Cin)
    b_eff = (s * (b - mean) + beta)[:, None]              # (Cout, 1)
    return w_eff, b_eff


# ---------------------------------------------------------------------------
# Plain-JAX reference (mirrors PyTorch eval-mode math) for correctness check.
# ---------------------------------------------------------------------------
def _bn_eval(y, gamma, beta, mean, var, eps=1e-5):
    inv = gamma / jnp.sqrt(var + eps)
    return (y - mean[None, :, None, None]) * inv[None, :, None, None] \
        + beta[None, :, None, None]


def attention_block_ref(g, x, p):
    dn = ("NCHW", "OIHW", "NCHW")
    g1 = lax.conv_general_dilated(g, p["wg"], (1, 1), [(0, 0), (0, 0)],
                                  dimension_numbers=dn) \
        + p["bg"][None, :, None, None]
    g1 = _bn_eval(g1, p["g_g"], p["be_g"], p["m_g"], p["v_g"])
    x1 = lax.conv_general_dilated(x, p["wx"], (1, 1), [(0, 0), (0, 0)],
                                  dimension_numbers=dn) \
        + p["bx"][None, :, None, None]
    x1 = _bn_eval(x1, p["g_x"], p["be_x"], p["m_x"], p["v_x"])
    psi = jnp.maximum(g1 + x1, 0.0)
    psi = lax.conv_general_dilated(psi, p["wpsi"], (1, 1), [(0, 0), (0, 0)],
                                   dimension_numbers=dn) \
        + p["bpsi"][None, :, None, None]
    psi = _bn_eval(psi, p["g_p"], p["be_p"], p["m_p"], p["v_p"])
    psi = jax.nn.sigmoid(psi)
    return x * psi


if __name__ == "__main__":
    key = jax.random.PRNGKey(0)
    N, F_g, F_l, H, W = 2, 8, 4, 16, 16
    eps = 1e-5

    ks = jax.random.split(key, 20)
    g_in = jax.random.normal(ks[0], (N, F_g, H, W), jnp.float32)
    x_in = jax.random.normal(ks[1], (N, F_l, H, W), jnp.float32)

    params = {
        # W_g: Conv2d(F_g, F_l, 1, bias=True) + BatchNorm2d(F_l)
        "wg": jax.random.normal(ks[2], (F_l, F_g, 1, 1), jnp.float32) * 0.3,
        "bg": jax.random.normal(ks[3], (F_l,), jnp.float32) * 0.1,
        "g_g": jax.random.uniform(ks[4], (F_l,), jnp.float32, 0.5, 1.5),
        "be_g": jax.random.normal(ks[5], (F_l,), jnp.float32) * 0.1,
        "m_g": jax.random.normal(ks[6], (F_l,), jnp.float32) * 0.1,
        "v_g": jax.random.uniform(ks[7], (F_l,), jnp.float32, 0.5, 1.5),
        # W_x: Conv2d(F_l, F_l, 1, bias=True) + BatchNorm2d(F_l)
        "wx": jax.random.normal(ks[8], (F_l, F_l, 1, 1), jnp.float32) * 0.3,
        "bx": jax.random.normal(ks[9], (F_l,), jnp.float32) * 0.1,
        "g_x": jax.random.uniform(ks[10], (F_l,), jnp.float32, 0.5, 1.5),
        "be_x": jax.random.normal(ks[11], (F_l,), jnp.float32) * 0.1,
        "m_x": jax.random.normal(ks[12], (F_l,), jnp.float32) * 0.1,
        "v_x": jax.random.uniform(ks[13], (F_l,), jnp.float32, 0.5, 1.5),
        # psi: Conv2d(F_l, 1, 1, bias=True) + BatchNorm2d(1)
        "wpsi": jax.random.normal(ks[14], (1, F_l, 1, 1), jnp.float32) * 0.3,
        "bpsi": jax.random.normal(ks[15], (1,), jnp.float32) * 0.1,
        "g_p": jax.random.uniform(ks[16], (1,), jnp.float32, 0.5, 1.5),
        "be_p": jax.random.normal(ks[17], (1,), jnp.float32) * 0.1,
        "m_p": jax.random.normal(ks[18], (1,), jnp.float32) * 0.1,
        "v_p": jax.random.uniform(ks[19], (1,), jnp.float32, 0.5, 1.5),
    }

    # Fold conv bias + eval-mode BN into effective weights / biases.
    wg_eff, bg_eff = _fold_conv_bn(params["wg"], params["bg"], params["g_g"],
                                   params["be_g"], params["m_g"], params["v_g"], eps)
    wx_eff, bx_eff = _fold_conv_bn(params["wx"], params["bx"], params["g_x"],
                                   params["be_x"], params["m_x"], params["v_x"], eps)
    wpsi_eff, bpsi_eff = _fold_conv_bn(params["wpsi"], params["bpsi"], params["g_p"],
                                       params["be_p"], params["m_p"], params["v_p"], eps)

    out = attention_block_pallas(g_in, x_in, wg_eff, bg_eff, wx_eff, bx_eff,
                                 wpsi_eff, bpsi_eff)
    out = jax.block_until_ready(out)

    ref = jax.block_until_ready(attention_block_ref(g_in, x_in, params))
    np.testing.assert_allclose(np.asarray(out), np.asarray(ref),
                               rtol=1e-4, atol=1e-4)

    print("KERNEL_OK")
</pallas_src>

<mosaic_0001>
module attributes {stable_mosaic.version = 11 : i64} {
  func.func @_attention_block_kernel(%arg0: i32, %arg1: i32, %arg2: memref<1x8x256xf32, #tpu.memory_space<vmem>>, %arg3: memref<1x4x256xf32, #tpu.memory_space<vmem>>, %arg4: memref<4x8xf32, #tpu.memory_space<vmem>>, %arg5: memref<4x1xf32, #tpu.memory_space<vmem>>, %arg6: memref<4x4xf32, #tpu.memory_space<vmem>>, %arg7: memref<4x1xf32, #tpu.memory_space<vmem>>, %arg8: memref<1x4xf32, #tpu.memory_space<vmem>>, %arg9: memref<1x1xf32, #tpu.memory_space<vmem>>, %arg10: memref<1x4x256xf32, #tpu.memory_space<vmem>>) attributes {dimension_semantics = [#tpu.dimension_semantics<parallel>, #tpu.dimension_semantics<parallel>], iteration_bounds = array<i64: 2, 1>, scalar_prefetch = 0 : i64, scratch_operands = 0 : i64, tpu.core_type = #tpu.core_type<tc>, window_params = [{transform_indices = @transform_0, window_bounds = array<i64: 1, 8, 256>}, {transform_indices = @transform_1, window_bounds = array<i64: 1, 4, 256>}, {pipeline_mode = #tpu.pipeline_mode<synchronous>, transform_indices = @transform_2, window_bounds = array<i64: 4, 8>}, {pipeline_mode = #tpu.pipeline_mode<synchronous>, transform_indices = @transform_3, window_bounds = array<i64: 4, 1>}, {pipeline_mode = #tpu.pipeline_mode<synchronous>, transform_indices = @transform_4, window_bounds = array<i64: 4, 4>}, {pipeline_mode = #tpu.pipeline_mode<synchronous>, transform_indices = @transform_5, window_bounds = array<i64: 4, 1>}, {pipeline_mode = #tpu.pipeline_mode<synchronous>, transform_indices = @transform_6, window_bounds = array<i64: 1, 4>}, {pipeline_mode = #tpu.pipeline_mode<synchronous>, transform_indices = @transform_7, window_bounds = array<i64: 1, 1>}, {transform_indices = @transform_8, window_bounds = array<i64: 1, 4, 256>}]} {
    %c0 = arith.constant 0 : index
    %c0_0 = arith.constant 0 : index
    %c0_1 = arith.constant 0 : index
    %0 = vector.load %arg2[%c0, %c0_0, %c0_1] : memref<1x8x256xf32, #tpu.memory_space<vmem>>, vector<1x8x256xf32>
    %1 = vector.shape_cast %0 : vector<1x8x256xf32> to vector<8x256xf32>
    %c0_2 = arith.constant 0 : index
    %c0_3 = arith.constant 0 : index
    %c0_4 = arith.constant 0 : index
    %2 = vector.load %arg3[%c0_2, %c0_3, %c0_4] : memref<1x4x256xf32, #tpu.memory_space<vmem>>, vector<1x4x256xf32>
    %3 = vector.shape_cast %2 : vector<1x4x256xf32> to vector<4x256xf32>
    %c0_5 = arith.constant 0 : index
    %c0_6 = arith.constant 0 : index
    %4 = vector.load %arg4[%c0_5, %c0_6] : memref<4x8xf32, #tpu.memory_space<vmem>>, vector<4x8xf32>
    %cst = arith.constant dense<0.000000e+00> : vector<4x256xf32>
    %5 = tpu.matmul %4, %1, %cst {dimension_numbers = #tpu.dot_dimension_numbers<[1], [0], [0], [1], [0, 0, 1, 1], [], []>} : vector<4x8xf32>, vector<8x256xf32>, vector<4x256xf32> -> vector<4x256xf32>
    %c0_7 = arith.constant 0 : index
    %c0_8 = arith.constant 0 : index
    %6 = vector.load %arg5[%c0_7, %c0_8] : memref<4x1xf32, #tpu.memory_space<vmem>>, vector<4x1xf32>
    %7 = vector.broadcast %6 : vector<4x1xf32> to vector<4x256xf32>
    %8 = arith.addf %5, %7 : vector<4x256xf32>
    %c0_9 = arith.constant 0 : index
    %c0_10 = arith.constant 0 : index
    %9 = vector.load %arg6[%c0_9, %c0_10] : memref<4x4xf32, #tpu.memory_space<vmem>>, vector<4x4xf32>
    %cst_11 = arith.constant dense<0.000000e+00> : vector<4x256xf32>
    %10 = tpu.matmul %9, %3, %cst_11 {dimension_numbers = #tpu.dot_dimension_numbers<[1], [0], [0], [1], [0, 0, 1, 1], [], []>} : vector<4x4xf32>, vector<4x256xf32>, vector<4x256xf32> -> vector<4x256xf32>
    %c0_12 = arith.constant 0 : index
    %c0_13 = arith.constant 0 : index
    %11 = vector.load %arg7[%c0_12, %c0_13] : memref<4x1xf32, #tpu.memory_space<vmem>>, vector<4x1xf32>
    %12 = vector.broadcast %11 : vector<4x1xf32> to vector<4x256xf32>
    %13 = arith.addf %10, %12 : vector<4x256xf32>
    %14 = arith.addf %8, %13 : vector<4x256xf32>
    %cst_14 = arith.constant 0.000000e+00 : f32
    %15 = vector.broadcast %cst_14 : f32 to vector<4x256xf32>
    %16 = arith.maximumf %14, %15 : vector<4x256xf32>
    %c0_15 = arith.constant 0 : index
    %c0_16 = arith.constant 0 : index
    %17 = vector.load %arg8[%c0_15, %c0_16] : memref<1x4xf32, #tpu.memory_space<vmem>>, vector<1x4xf32>
    %cst_17 = arith.constant dense<0.000000e+00> : vector<1x256xf32>
    %18 = tpu.matmul %17, %16, %cst_17 {dimension_numbers = #tpu.dot_dimension_numbers<[1], [0], [0], [1], [0, 0, 1, 1], [], []>} : vector<1x4xf32>, vector<4x256xf32>, vector<1x256xf32> -> vector<1x256xf32>
    %c0_18 = arith.constant 0 : index
    %c0_19 = arith.constant 0 : index
    %19 = vector.load %arg9[%c0_18, %c0_19] : memref<1x1xf32, #tpu.memory_space<vmem>>, vector<1x1xf32>
    %20 = vector.broadcast %19 : vector<1x1xf32> to vector<1x256xf32>
    %21 = arith.addf %18, %20 : vector<1x256xf32>
    %22 = arith.negf %21 : vector<1x256xf32>
    %23 = math.exp %22 : vector<1x256xf32>
    %cst_20 = arith.constant 1.000000e+00 : f32
    %24 = vector.broadcast %cst_20 : f32 to vector<1x256xf32>
    %25 = arith.addf %24, %23 : vector<1x256xf32>
    %26 = arith.divf %24, %25 : vector<1x256xf32>
    %27 = vector.broadcast %26 : vector<1x256xf32> to vector<4x256xf32>
    %28 = arith.mulf %3, %27 : vector<4x256xf32>
    %c0_21 = arith.constant 0 : index
    %c0_22 = arith.constant 0 : index
    %c0_23 = arith.constant 0 : index
    %29 = vector.load %arg10[%c0_21, %c0_22, %c0_23] : memref<1x4x256xf32, #tpu.memory_space<vmem>>, vector<1x4x256xf32>
    %30 = vector.shape_cast %29 : vector<1x4x256xf32> to vector<4x256xf32>
    %31 = vector.shape_cast %28 : vector<4x256xf32> to vector<1x4x256xf32>
    tpu.vector_store %arg10[%c0_21, %c0_22, %c0_23], %31 {strides = array<i32>} : memref<1x4x256xf32, #tpu.memory_space<vmem>>, vector<1x4x256xf32>,
    return
  }
  func.func @transform_0(%arg0: i32, %arg1: i32) -> (i32, i32, i32) {
    %c0_i32 = arith.constant 0 : i32
    %c0_i32_0 = arith.constant 0 : i32
    return %arg0, %c0_i32, %arg1 : i32, i32, i32
  }
  func.func @transform_1(%arg0: i32, %arg1: i32) -> (i32, i32, i32) {
    %c0_i32 = arith.constant 0 : i32
    %c0_i32_0 = arith.constant 0 : i32
    return %arg0, %c0_i32, %arg1 : i32, i32, i32
  }
  func.func @transform_2(%arg0: i32, %arg1: i32) -> (i32, i32) {
    %c0_i32 = arith.constant 0 : i32
    %c0_i32_0 = arith.constant 0 : i32
    %c0_i32_1 = arith.constant 0 : i32
    return %c0_i32, %c0_i32_0 : i32, i32
  }
  func.func @transform_3(%arg0: i32, %arg1: i32) -> (i32, i32) {
    %c0_i32 = arith.constant 0 : i32
    %c0_i32_0 = arith.constant 0 : i32
    %c0_i32_1 = arith.constant 0 : i32
    return %c0_i32, %c0_i32_0 : i32, i32
  }
  func.func @transform_4(%arg0: i32, %arg1: i32) -> (i32, i32) {
    %c0_i32 = arith.constant 0 : i32
    %c0_i32_0 = arith.constant 0 : i32
    %c0_i32_1 = arith.constant 0 : i32
    return %c0_i32, %c0_i32_0 : i32, i32
  }
  func.func @transform_5(%arg0: i32, %arg1: i32) -> (i32, i32) {
    %c0_i32 = arith.constant 0 : i32
    %c0_i32_0 = arith.constant 0 : i32
    %c0_i32_1 = arith.constant 0 : i32
    return %c0_i32, %c0_i32_0 : i32, i32
  }
  func.func @transform_6(%arg0: i32, %arg1: i32) -> (i32, i32) {
    %c0_i32 = arith.constant 0 : i32
    %c0_i32_0 = arith.constant 0 : i32
    %c0_i32_1 = arith.constant 0 : i32
    return %c0_i32, %c0_i32_0 : i32, i32
  }
  func.func @transform_7(%arg0: i32, %arg1: i32) -> (i32, i32) {
    %c0_i32 = arith.constant 0 : i32
    %c0_i32_0 = arith.constant 0 : i32
    %c0_i32_1 = arith.constant 0 : i32
    return %c0_i32, %c0_i32_0 : i32, i32
  }
  func.func @transform_8(%arg0: i32, %arg1: i32) -> (i32, i32, i32) {
    %c0_i32 = arith.constant 0 : i32
    %c0_i32_0 = arith.constant 0 : i32
    return %arg0, %c0_i32, %arg1 : i32, i32, i32
  }
}

</mosaic_0001>

<bundles_post_ra>
// kernel: attention_block_pallas.1
= control target key start
LH: loop header
LB: loop body
LE: loop exit
PB: predicated region body
PF: predicated region fallthrough
CT: control target
= control target key end

     0   :  { %s919_s29 = smov 0   ;;  %s921_s30 = smov 0   ;;  %s984_s0 = inlined_call_operand.vmem [shape: f32[2,8,256], index: 0, kind: input, shape index: {}]   ;;  %s985_s1 = inlined_call_operand.vmem [shape: f32[2,4,256], index: 1, kind: input, shape index: {}]   ;;  %s986_s2 = inlined_call_operand.vmem [shape: f32[4,8], index: 2, kind: input, shape index: {}]   ;;  %s987_s3 = inlined_call_operand.vmem [shape: f32[4,1], index: 3, kind: input, shape index: {}]   ;;  %s988_s4 = inlined_call_operand.vmem [shape: f32[4,4], index: 4, kind: input, shape index: {}]   ;;  %s989_s5 = inlined_call_operand.vmem [shape: f32[4,1], index: 5, kind: input, shape index: {}]   ;;  %s990_s6 = inlined_call_operand.vmem [shape: f32[1,4], index: 6, kind: input, shape index: {}]   ;;  %s991_s7 = inlined_call_operand.<no memory space> [shape: f32[1,1], index: 7, kind: input, shape index: {}]   ;;  %s992_s8 = inlined_call_operand.vmem [shape: f32[2,4,256], index: 8, kind: output, shape index: {}]  }
   0x1   :  { %v13_v0 = vstv %s991_s7  ;;  %s923_s9 = smov 0  }
   0x2   :  { %14 = vst [vmem:[#allocation2] sm:$0x1] %v13_v0 }
   0x3 LB: > { %s32_s7 = sadd.s32 1, %s863_s30  ;;  %p787_p0 = scmp.ge.s32.totalorder %s867_s9, 1  ;;  %s867_s9 = sphi %s923_s9, %s20_s9   ;;  %s863_s30 = sphi %s921_s30, %s994_s30   ;;  %s859_s29 = sphi %s919_s29, %s993_s29  }
   0x4   : > { %p34_p1 = scmp.ge.s32.totalorder %s32_s7, 2  ;;  %p302_p2 = scmp.lt.s32.totalorder %s867_s9, 3 }
   0x6   : > { %s996_s7 = smov (%p34_p1, %s32_s7), 0  ;;  %p303_p3 = pnand %p787_p0, %p302_p2 }
   0x7   : > { %p354_p4 = scmp.lt.s32.totalorder (!%p303_p3), %s859_s29, 1 }
   0x8   : > { %306 = sbr.rel (%p303_p3) target bundleno = 461 (0x1cd), region = 52 }
   0xd   : > { %v869_v1 = vmov 0.0   ;;  %v387_v2 = vld [vmem:[%s987_s3] sm:$0xf]  ;;  %s998_s29 = smov (!%p354_p4, %s859_s29), 1  ;;  %v870_v3 = vmov 0   ;;  %vm393_vm0 = vcmask 64512   ;;  %v568_v27 = vlaneseq }
   0xe   : > { %461 = vmatprep.mubr.f32.mxu0 %v869_v1  ;;  %550 = vmatprep.mubr.f32.mxu1 %v869_v1  ;;  %s805_s12 = sshll.u32 %s998_s29, 4  ;;  %s806_s13 = sshll.u32 %s998_s29, 3  ;;  %v469_v4 = vld [vmem:[%s989_s5] sm:$0xf]  ;;  %vm481_vm1 = vcmask 1043456   ;;  %vm477_vm2 = vcmask 31744  }
   0xf   : > { %834 = vset.pattern.permute.xlu0 %v870_v3  ;;  %835 = vset.pattern.permute.xlu1 %v870_v3  ;;  %s361_s18 = scalar_lea.vmem %s984_s0, %s805_s12  ;;  %v386_v5 = vld [vmem:[%s986_s2] sm:$0xf]  ;;  %s371_s23 = scalar_lea.vmem %s985_s1, %s806_s13  ;;  %v569_v28 = vshrl.u32 %v568_v27, 7 }
  0x10   : > { %390 = vperm.xlu0 %834, %v387_v2   ;;  %v384_v6 = vld [vmem:[%s361_s18 + $0x8] sm:$0xff]  ;;  %v383_v7 = vld [vmem:[%s361_s18] sm:$0xff]  ;;  %s381_s11 = scalar_lea.vmem %s992_s8, %s806_s13 }
  0x11   : > { %v385_v8 = vld [vmem:[%s371_s23] sm:$0xff]  ;;  %427 = vmatprep.subr.mxu0 %v384_v6  ;;  %v570_v29 = vsub.s32 0, %v569_v28 }
  0x12   : > { %v476_v9 = vcombine.high %v385_v8, %v385_v8  ;;  %428 = vmatpush1.msra.mxu0 %v383_v7  ;;  %v468_v10 = vld [vmem:[%s988_s4] sm:$0xf] }
  0x13   : > { %794 = vmatmul.mubr.msk.f32.vlgmr.msra.gmra.mxu0 %vm393_vm0, %v386_v5  ;;  %v562_v11 = vld [vmem:[#allocation2] sm:$0x1] }
  0x14   : > { %472 = vperm.xlu0 %834, %v469_v4   ;;  %795 = vmatprep.subr.msk.mxu1 %vm481_vm1, %v476_v9  ;;  %v561_v26 = vld [vmem:[%s990_s6] sm:$0x1] }
  0x15   : > { %796 = vmatpush1.msk.msra.mxu1 %vm481_vm1, %v385_v8  ;;  %645 = vmatprep.mubr.f32.mxu0 %v869_v1 }
  0x16   : > { %797 = vmatmul.mubr.msk.f32.vlgmr.msra.gmra.mxu1 %vm477_vm2, %v468_v10  ;;  %565 = vperm.xlu1 %835, %v562_v11  }
  0x8b   : > { %v391_v12 = vpop.permute.xlu0 %390 }
  0x8f   : > { %v473_v14 = vpop.permute.xlu0 %472 }
  0x91   : > { %v566_v30 = vpop.permute.xlu1 %565 }
  0x92   : > { %v571_v31 = vrot.slane %v566_v30, %v570_v29 }
  0xd3   : > { %v463_v13 = vpop.f32.mrf.mxu0 }
  0xd4   : > { %v464_v18 = vadd.f32 %v463_v13, %v391_v12 }
  0xd5   : > { %v465_v15 = vpop.f32.mrf.mxu0 }
  0xd6   : > { %v552_v16 = vpop.f32.mrf.mxu1  ;;  %v466_v20 = vadd.f32 %v465_v15, %v391_v12 }
  0xd7   : > { %v553_v17 = vadd.f32 %v552_v16, %v473_v14 }
  0xd8   : > { %v554_v19 = vpop.f32.mrf.mxu1 }
  0xd9   : > { %v555_v21 = vadd.f32 %v554_v19, %v473_v14  ;;  %v557_v22 = vadd.f32 %v553_v17, %v464_v18 }
  0xdb   : > { %v558_v23 = vadd.f32 %v555_v21, %v466_v20  ;;  %v559_v25 = vmax.f32 %v557_v22, 0.0 }
  0xdd   : > { %v560_v24 = vmax.f32 %v558_v23, 0.0 }
  0xdf   : > { %798 = vmatprep.subr.msk.mxu0 %vm481_vm1, %v560_v24 }
  0xe0   : > { %799 = vmatpush1.msk.msra.mxu0 %vm481_vm1, %v559_v25 }
  0xe1   : > { %800 = vmatmul.mubr.msk.f32.vlgmr.msra.gmra.mxu0 %vm477_vm2, %v561_v26 }
 0x1a1   : > { %v647_v32 = vpop.f32.mrf.mxu0 }
 0x1a2   : > { %v648_v33 = vadd.f32 %v647_v32, %v571_v31 }
 0x1a3   : > { %v649_v34 = vpop.f32.mrf.mxu0 }
 0x1a4   : > { %v801_v35 = vmul.f32 -1.442695, %v648_v33  ;;  %v650_v36 = vadd.f32 %v649_v34, %v571_v31 }
 0x1a6   : > { %837 = vpow2.f32 %v801_v35  ;;  %v802_v37 = vmul.f32 -1.442695, %v650_v36 }
 0x1a8   : > { %839 = vpow2.f32 %v802_v37 }
 0x1b3   : > { %v838_v38 = vpop.eup %837 }
 0x1b4   : > { %v658_v39 = vadd.f32 1.0, %v838_v38 }
 0x1b5   : > { %v840_v40 = vpop.eup %839 }
 0x1b6   : > { %841 = vrcp.f32 %v658_v39  ;;  %v659_v41 = vadd.f32 1.0, %v840_v40 }
 0x1b8   : > { %843 = vrcp.f32 %v659_v41 }
 0x1c3   : > { %v842_v42 = vpop.eup %841 }
 0x1c4   : > { %v667_v44 = vrot.slane %v842_v42, %v570_v29 }
 0x1c5   : > { %v844_v43 = vpop.eup %843 }
 0x1c6   : > { %v671_v45 = vrot.slane %v844_v43, %v570_v29 }
 0x1c8   : > { %v674_v46 = vcombine.low %v667_v44, %v671_v45 }
 0x1ca   : > { %v676_v47 = vmul.f32 %v674_v46, %v385_v8 }
 0x1cc   : > { %677 = vst [vmem:[%s381_s11] sm:$0xff] %v676_v47 }
 0x1cd PF: > { %s20_s9 = sadd.s32 1, %s867_s9   ;;  %s993_s29 = smov %s863_s30 }
 0x1ce   : > { %p17_p5 = scmp.ge.s32.totalorder %s20_s9, 4   ;;  %s994_s30 = smov %s996_s7 }
 0x1d0   :  { %19 = sbr.rel (!%p17_p5) target bundleno = 3 (0x3), region = 85 }

</bundles_post_ra>
